<compile_context>
chip_gen: v5e
topology: v5e:2x2
jax: 0.10.0
libtpu: 0.0.40
codegen_flags: <defaults>
</compile_context>

<pallas_src>
import functools
import math

import jax
import jax.numpy as jnp
from jax.experimental import pallas as pl
from jax.experimental.pallas import tpu as pltpu


def _pick_tile(s, candidates=(512, 256, 128)):
    # Largest 128-aligned tile that divides S; otherwise a single full-length
    # tile (small or odd sequence lengths).
    for t in candidates:
        if s >= t and s % t == 0:
            return t
    return s


def _vmem_limit_bytes():
    # ~3/4 of physical VMEM, capped at 96 MiB (v5e/v6e have 128 MiB, v7x 64 MiB
    # per TC -> ~48 MiB there). Falls back to a safe value if the query fails.
    try:
        cap = int(pltpu.get_tpu_info().vmem_capacity_bytes)
    except Exception:
        cap = 128 * 1024 * 1024
    return max(32 * 1024 * 1024, min(cap * 3 // 4, 96 * 1024 * 1024))


def _flash_attention_kernel(q_ref, k_ref, v_ref, w_out_ref, b_out_ref, o_ref,
                            acc_scr, m_scr, l_scr,
                            *, n_heads, d_head, tq, tk, causal):
    qi = pl.program_id(1)
    ki = pl.program_id(2)
    n_kv = pl.num_programs(2)

    # ---- once per q tile (first kv step): init flash statistics --------------
    @pl.when(ki == 0)
    def _init():
        m_scr[...] = jnp.full(m_scr.shape, -jnp.inf, dtype=m_scr.dtype)
        l_scr[...] = jnp.zeros_like(l_scr)
        acc_scr[...] = jnp.zeros_like(acc_scr)

    # ---- per kv step: scores + online softmax (mask applied only if needed) --
    def _make_step(apply_mask):
        def _step():
            q = q_ref[0]                                   # (H, tq, dh) bf16 (pre-scaled)
            k = k_ref[0]                                   # (H, tk, dh) bf16
            v = v_ref[0]                                   # (H, tk, dh) bf16
            # All heads batched through the MXU: (H, tq, tk) f32.
            s = jnp.einsum("hqd,hkd->hqk", q, k,
                           preferred_element_type=jnp.float32)
            if apply_mask:
                # Mask built once per step (shared across heads). Large finite
                # negative instead of -inf keeps the online softmax NaN-safe.
                q_pos = qi * tq + jax.lax.broadcasted_iota(jnp.int32, (1, tq, tk), 1)
                k_pos = ki * tk + jax.lax.broadcasted_iota(jnp.int32, (1, tq, tk), 2)
                s = jnp.where(k_pos > q_pos, -1e30, s)

            m_prev = m_scr[...]                            # (H, tq, 1) f32
            m_new = jnp.maximum(m_prev, jnp.max(s, axis=-1, keepdims=True))
            alpha = jnp.exp(m_prev - m_new)                # tiny tensor, f32 exp
            # Big exp at bf16 EUP rate; subtraction stays in f32 for accuracy.
            p = jnp.exp((s - m_new).astype(jnp.bfloat16))  # (H, tq, tk) bf16
            l_scr[...] = alpha * l_scr[...] + jnp.sum(
                p, axis=-1, keepdims=True, dtype=jnp.float32)
            acc_scr[...] = alpha * acc_scr[...] + jnp.einsum(
                "hqk,hkd->hqd", p, v, preferred_element_type=jnp.float32)
            m_scr[...] = m_new
        return _step

    if causal:
        q_first = qi * tq
        q_last = qi * tq + (tq - 1)
        k_first = ki * tk
        k_last = ki * tk + (tk - 1)
        computed = k_first <= q_last                  # block not fully masked
        straddles = k_last > q_first                  # block touches the diagonal
        pl.when(computed & straddles)(_make_step(True))
        pl.when(computed & jnp.logical_not(straddles))(_make_step(False))
    else:
        _make_step(False)()

    # ---- once per q tile (last kv step): normalize + out_proj + store --------
    @pl.when(ki == n_kv - 1)
    def _finalize():
        inv_l = pl.reciprocal(l_scr[...], approx=True)       # EUP, off VPU path
        attn = (acc_scr[...] * inv_l).astype(jnp.bfloat16)    # (H, tq, dh)
        d_out = o_ref.shape[-1]
        out = jnp.zeros((tq, d_out), jnp.float32)
        for h in range(n_heads):                              # once per q tile
            out = out + jnp.dot(attn[h], w_out_ref[h],
                                preferred_element_type=jnp.float32)
        out = out + b_out_ref[...]
        o_ref[0] = out.astype(o_ref.dtype)                    # lane-dense (tq, D)


def self_attention(x, w_in, b_in, w_out, b_out, *, n_heads, causal=False,
                   tile_q=None, tile_k=None):
    B, S, D = x.shape
    assert D % n_heads == 0
    d_head = D // n_heads

    tq = tile_q if tile_q is not None else _pick_tile(S)
    tk = tile_k if tile_k is not None else _pick_tile(S)
    assert S % tq == 0 and S % tk == 0
    grid = (B, S // tq, S // tk)
    out_dtype = x.dtype
    scale = 1.0 / math.sqrt(d_head)

    # ---- QKV projection hoisted out of the flash kernel (one-shot XLA matmul).
    # bf16 operands / f32 accumulation; q pre-scaled; head-major bf16 layout so
    # the kernel needs no per-head staging.
    qkv = jnp.einsum("bsd,de->bse", x.astype(jnp.bfloat16),
                     w_in.astype(jnp.bfloat16),
                     preferred_element_type=jnp.float32)
    qkv = qkv + b_in[0].astype(jnp.float32)
    q, k, v = jnp.split(qkv, 3, axis=-1)

    def _to_heads(t):
        return (t.reshape(B, S, n_heads, d_head)
                 .transpose(0, 2, 1, 3)
                 .astype(jnp.bfloat16))

    q_hm = _to_heads(q * scale)                 # (B, H, S, dh)
    k_hm = _to_heads(k)
    v_hm = _to_heads(v)

    w_out_r = w_out.reshape(n_heads, d_head, D).astype(jnp.bfloat16)
    b_out_f = b_out.astype(jnp.float32)

    # kv index map. For causal, clamp to the last block this q tile needs so the
    # DMA of fully-masked (compute-skipped) kv blocks is elided (same block
    # index as the previous step -> no copy issued).
    if causal:
        def kv_map(b, qi, ki):
            last_needed = (qi * tq + tq - 1) // tk
            return (b, 0, jnp.minimum(ki, last_needed), 0)
    else:
        def kv_map(b, qi, ki):
            return (b, 0, ki, 0)

    kernel = functools.partial(
        _flash_attention_kernel, n_heads=n_heads, d_head=d_head,
        tq=tq, tk=tk, causal=causal)

    return pl.pallas_call(
        kernel,
        out_shape=jax.ShapeDtypeStruct((B, S, D), out_dtype),
        grid=grid,
        in_specs=[
            pl.BlockSpec((1, n_heads, tq, d_head), lambda b, qi, ki: (b, 0, qi, 0)),
            pl.BlockSpec((1, n_heads, tk, d_head), kv_map),
            pl.BlockSpec((1, n_heads, tk, d_head), kv_map),
            # out_proj params: constant index maps -> fetched once, stay resident.
            pl.BlockSpec((n_heads, d_head, D), lambda b, qi, ki: (0, 0, 0)),
            pl.BlockSpec((1, D), lambda b, qi, ki: (0, 0)),
        ],
        out_specs=pl.BlockSpec((1, tq, D), lambda b, qi, ki: (b, qi, 0)),
        scratch_shapes=[
            pltpu.VMEM((n_heads, tq, d_head), jnp.float32),   # flash accumulator
            pltpu.VMEM((n_heads, tq, 1), jnp.float32),        # running max m
            pltpu.VMEM((n_heads, tq, 1), jnp.float32),        # running sum l
        ],
        compiler_params=pltpu.CompilerParams(
            dimension_semantics=("parallel", "parallel", "arbitrary"),
            vmem_limit_bytes=_vmem_limit_bytes()),
    )(q_hm, k_hm, v_hm, w_out_r, b_out_f)


def _reference(x, w_in, b_in, w_out, b_out, n_heads, causal):
    # Pure-JAX f32 mirror of the PyTorch forward for validation.
    B, S, D = x.shape
    d_head = D // n_heads
    qkv = x @ w_in + b_in[0]
    q, k, v = jnp.split(qkv, 3, axis=-1)
    q = q.reshape(B, S, n_heads, d_head).transpose(0, 2, 1, 3)
    k = k.reshape(B, S, n_heads, d_head).transpose(0, 2, 1, 3)
    v = v.reshape(B, S, n_heads, d_head).transpose(0, 2, 1, 3)
    w = jnp.einsum("bhqd,bhkd->bhqk", q, k)
    if causal:
        mask = jnp.triu(jnp.ones((S, S), dtype=bool), 1)
        w = jnp.where(mask, -jnp.inf, w)
    w = w / math.sqrt(d_head)
    w = jax.nn.softmax(w, axis=-1)
    o = jnp.einsum("bhqk,bhkd->bhqd", w, v)
    o = o.transpose(0, 2, 1, 3).reshape(B, S, D)
    return o @ w_out + b_out[0]


if __name__ == "__main__":
    def _run_case(B, S, D, n_heads, tile=None):
        key = jax.random.PRNGKey(0)
        kx, kw1, kb1, kw2, kb2 = jax.random.split(key, 5)
        x = jax.random.normal(kx, (B, S, D), dtype=jnp.float32)
        w_in = jax.random.normal(kw1, (D, 3 * D), dtype=jnp.float32) * 0.05
        b_in = jax.random.normal(kb1, (1, 3 * D), dtype=jnp.float32) * 0.05
        w_out = jax.random.normal(kw2, (D, D), dtype=jnp.float32) * 0.05
        b_out = jax.random.normal(kb2, (1, D), dtype=jnp.float32) * 0.05

        for causal in (False, True):
            out = self_attention(x, w_in, b_in, w_out, b_out,
                                 n_heads=n_heads, causal=causal,
                                 tile_q=tile, tile_k=tile)
            out = jax.block_until_ready(out)
            ref = _reference(x, w_in, b_in, w_out, b_out, n_heads, causal)
            assert out.shape == (B, S, D)
            max_err = float(jnp.max(jnp.abs(out - ref)))
            assert jnp.allclose(out, ref, atol=3e-2, rtol=3e-2), (
                f"mismatch vs reference (B={B}, S={S}, D={D}, "
                f"causal={causal}, tile={tile}, max_err={max_err})")

    # Small shapes consistent with the module (batch=2, seq=8, hidden=32).
    _run_case(B=2, S=8, D=32, n_heads=4)
    # Larger shape, single big (512) tile per batch element.
    _run_case(B=2, S=512, D=256, n_heads=4)
    # Same shape with forced 128 tiles: exercises the multi-kv-step online
    # softmax, diagonal-straddle masking, and causal compute/DMA skipping.
    _run_case(B=2, S=512, D=256, n_heads=4, tile=128)

    print("KERNEL_OK")
</pallas_src>

<mosaic_0001>
module attributes {stable_mosaic.version = 11 : i64} {
  func.func @_flash_attention_kernel(%arg0: i32, %arg1: i32, %arg2: i32, %arg3: memref<1x4x8x8xbf16, #tpu.memory_space<vmem>>, %arg4: memref<1x4x8x8xbf16, #tpu.memory_space<vmem>>, %arg5: memref<1x4x8x8xbf16, #tpu.memory_space<vmem>>, %arg6: memref<4x8x32xbf16, #tpu.memory_space<vmem>>, %arg7: memref<1x32xf32, #tpu.memory_space<vmem>>, %arg8: memref<1x8x32xf32, #tpu.memory_space<vmem>>, %arg9: memref<4x8x8xf32, #tpu.memory_space<vmem>>, %arg10: memref<4x8x1xf32, #tpu.memory_space<vmem>>, %arg11: memref<4x8x1xf32, #tpu.memory_space<vmem>>) attributes {dimension_semantics = [#tpu.dimension_semantics<parallel>, #tpu.dimension_semantics<parallel>, #tpu.dimension_semantics<arbitrary>], iteration_bounds = array<i64: 2, 1, 1>, scalar_prefetch = 0 : i64, scratch_operands = 3 : i64, tpu.core_type = #tpu.core_type<tc>, window_params = [{transform_indices = @transform_0, window_bounds = array<i64: 1, 4, 8, 8>}, {transform_indices = @transform_1, window_bounds = array<i64: 1, 4, 8, 8>}, {transform_indices = @transform_2, window_bounds = array<i64: 1, 4, 8, 8>}, {pipeline_mode = #tpu.pipeline_mode<synchronous>, transform_indices = @transform_3, window_bounds = array<i64: 4, 8, 32>}, {pipeline_mode = #tpu.pipeline_mode<synchronous>, transform_indices = @transform_4, window_bounds = array<i64: 1, 32>}, {transform_indices = @transform_5, window_bounds = array<i64: 1, 8, 32>}]} {
    %c0_i32 = arith.constant 0 : i32
    %0 = arith.cmpi eq, %arg2, %c0_i32 : i32
    %1 = arith.extui %0 : i1 to i32
    %c0_i32_0 = arith.constant 0 : i32
    %2 = arith.cmpi ne, %1, %c0_i32_0 : i32
    scf.if %2 {
      %cst_35 = arith.constant 0xFF800000 : f32
      %37 = vector.broadcast %cst_35 : f32 to vector<4x8x1xf32>
      %c0_36 = arith.constant 0 : index
      %c0_37 = arith.constant 0 : index
      %c0_38 = arith.constant 0 : index
      %38 = vector.load %arg10[%c0_36, %c0_37, %c0_38] : memref<4x8x1xf32, #tpu.memory_space<vmem>>, vector<4x8x1xf32>
      tpu.vector_store %arg10[%c0_36, %c0_37, %c0_38], %37 {strides = array<i32>} : memref<4x8x1xf32, #tpu.memory_space<vmem>>, vector<4x8x1xf32>,
      %cst_39 = arith.constant 0.000000e+00 : f32
      %39 = vector.broadcast %cst_39 : f32 to vector<4x8x1xf32>
      %c0_40 = arith.constant 0 : index
      %c0_41 = arith.constant 0 : index
      %c0_42 = arith.constant 0 : index
      %40 = vector.load %arg11[%c0_40, %c0_41, %c0_42] : memref<4x8x1xf32, #tpu.memory_space<vmem>>, vector<4x8x1xf32>
      tpu.vector_store %arg11[%c0_40, %c0_41, %c0_42], %39 {strides = array<i32>} : memref<4x8x1xf32, #tpu.memory_space<vmem>>, vector<4x8x1xf32>,
      %cst_43 = arith.constant 0.000000e+00 : f32
      %41 = vector.broadcast %cst_43 : f32 to vector<4x8x8xf32>
      %c0_44 = arith.constant 0 : index
      %c0_45 = arith.constant 0 : index
      %c0_46 = arith.constant 0 : index
      %42 = vector.load %arg9[%c0_44, %c0_45, %c0_46] : memref<4x8x8xf32, #tpu.memory_space<vmem>>, vector<4x8x8xf32>
      tpu.vector_store %arg9[%c0_44, %c0_45, %c0_46], %41 {strides = array<i32>} : memref<4x8x8xf32, #tpu.memory_space<vmem>>, vector<4x8x8xf32>,
    } else {
    }
    %c0 = arith.constant 0 : index
    %c0_1 = arith.constant 0 : index
    %c0_2 = arith.constant 0 : index
    %c0_3 = arith.constant 0 : index
    %3 = vector.load %arg3[%c0, %c0_1, %c0_2, %c0_3] : memref<1x4x8x8xbf16, #tpu.memory_space<vmem>>, vector<1x4x8x8xbf16>
    %4 = vector.shape_cast %3 : vector<1x4x8x8xbf16> to vector<4x8x8xbf16>
    %c0_4 = arith.constant 0 : index
    %c0_5 = arith.constant 0 : index
    %c0_6 = arith.constant 0 : index
    %c0_7 = arith.constant 0 : index
    %5 = vector.load %arg4[%c0_4, %c0_5, %c0_6, %c0_7] : memref<1x4x8x8xbf16, #tpu.memory_space<vmem>>, vector<1x4x8x8xbf16>
    %6 = vector.shape_cast %5 : vector<1x4x8x8xbf16> to vector<4x8x8xbf16>
    %c0_8 = arith.constant 0 : index
    %c0_9 = arith.constant 0 : index
    %c0_10 = arith.constant 0 : index
    %c0_11 = arith.constant 0 : index
    %7 = vector.load %arg5[%c0_8, %c0_9, %c0_10, %c0_11] : memref<1x4x8x8xbf16, #tpu.memory_space<vmem>>, vector<1x4x8x8xbf16>
    %8 = vector.shape_cast %7 : vector<1x4x8x8xbf16> to vector<4x8x8xbf16>
    "tpu.trace_start"() <{level = 10 : i32, message = "hqd,hkd->hqk"}> : () -> ()
    %cst = arith.constant dense<0.000000e+00> : vector<4x8x8xf32>
    %9 = tpu.matmul %4, %6, %cst {dimension_numbers = #tpu.dot_dimension_numbers<[2], [2], [1], [1], [0, 0, 0, 1, 1, 1], [0], [0]>} : vector<4x8x8xbf16>, vector<4x8x8xbf16>, vector<4x8x8xf32> -> vector<4x8x8xf32>
    "tpu.trace_stop"() : () -> ()
    %c0_12 = arith.constant 0 : index
    %c0_13 = arith.constant 0 : index
    %c0_14 = arith.constant 0 : index
    %10 = vector.load %arg10[%c0_12, %c0_13, %c0_14] : memref<4x8x1xf32, #tpu.memory_space<vmem>>, vector<4x8x1xf32>
    %cst_15 = arith.constant dense<0xFF800000> : vector<4x8xf32>
    %11 = vector.multi_reduction <maximumf>, %9, %cst_15 [2] : vector<4x8x8xf32> to vector<4x8xf32>
    %12 = vector.shape_cast %11 : vector<4x8xf32> to vector<4x8x1xf32>
    %13 = arith.maximumf %10, %12 : vector<4x8x1xf32>
    %14 = arith.subf %10, %13 : vector<4x8x1xf32>
    %15 = math.exp %14 : vector<4x8x1xf32>
    %16 = vector.broadcast %13 : vector<4x8x1xf32> to vector<4x8x8xf32>
    %17 = arith.subf %9, %16 : vector<4x8x8xf32>
    %18 = arith.truncf %17 : vector<4x8x8xf32> to vector<4x8x8xbf16>
    %19 = math.exp %18 : vector<4x8x8xbf16>
    %c0_16 = arith.constant 0 : index
    %c0_17 = arith.constant 0 : index
    %c0_18 = arith.constant 0 : index
    %20 = vector.load %arg11[%c0_16, %c0_17, %c0_18] : memref<4x8x1xf32, #tpu.memory_space<vmem>>, vector<4x8x1xf32>
    %21 = arith.mulf %15, %20 : vector<4x8x1xf32>
    %22 = arith.extf %19 : vector<4x8x8xbf16> to vector<4x8x8xf32>
    %cst_19 = arith.constant dense<0.000000e+00> : vector<4x8xf32>
    %23 = vector.multi_reduction <add>, %22, %cst_19 [2] : vector<4x8x8xf32> to vector<4x8xf32>
    %24 = vector.shape_cast %23 : vector<4x8xf32> to vector<4x8x1xf32>
    %25 = arith.addf %21, %24 : vector<4x8x1xf32>
    %c0_20 = arith.constant 0 : index
    %c0_21 = arith.constant 0 : index
    %c0_22 = arith.constant 0 : index
    %26 = vector.load %arg11[%c0_20, %c0_21, %c0_22] : memref<4x8x1xf32, #tpu.memory_space<vmem>>, vector<4x8x1xf32>
    tpu.vector_store %arg11[%c0_20, %c0_21, %c0_22], %25 {strides = array<i32>} : memref<4x8x1xf32, #tpu.memory_space<vmem>>, vector<4x8x1xf32>,
    %c0_23 = arith.constant 0 : index
    %c0_24 = arith.constant 0 : index
    %c0_25 = arith.constant 0 : index
    %27 = vector.load %arg9[%c0_23, %c0_24, %c0_25] : memref<4x8x8xf32, #tpu.memory_space<vmem>>, vector<4x8x8xf32>
    %28 = vector.broadcast %15 : vector<4x8x1xf32> to vector<4x8x8xf32>
    %29 = arith.mulf %28, %27 : vector<4x8x8xf32>
    "tpu.trace_start"() <{level = 10 : i32, message = "hqk,hkd->hqd"}> : () -> ()
    %cst_26 = arith.constant dense<0.000000e+00> : vector<4x8x8xf32>
    %30 = tpu.matmul %19, %8, %cst_26 {dimension_numbers = #tpu.dot_dimension_numbers<[2], [1], [1], [2], [0, 0, 0, 1, 1, 2], [0], [0]>} : vector<4x8x8xbf16>, vector<4x8x8xbf16>, vector<4x8x8xf32> -> vector<4x8x8xf32>
    "tpu.trace_stop"() : () -> ()
    %31 = arith.addf %29, %30 : vector<4x8x8xf32>
    %c0_27 = arith.constant 0 : index
    %c0_28 = arith.constant 0 : index
    %c0_29 = arith.constant 0 : index
    %32 = vector.load %arg9[%c0_27, %c0_28, %c0_29] : memref<4x8x8xf32, #tpu.memory_space<vmem>>, vector<4x8x8xf32>
    tpu.vector_store %arg9[%c0_27, %c0_28, %c0_29], %31 {strides = array<i32>} : memref<4x8x8xf32, #tpu.memory_space<vmem>>, vector<4x8x8xf32>,
    %c0_30 = arith.constant 0 : index
    %c0_31 = arith.constant 0 : index
    %c0_32 = arith.constant 0 : index
    %33 = vector.load %arg10[%c0_30, %c0_31, %c0_32] : memref<4x8x1xf32, #tpu.memory_space<vmem>>, vector<4x8x1xf32>
    tpu.vector_store %arg10[%c0_30, %c0_31, %c0_32], %13 {strides = array<i32>} : memref<4x8x1xf32, #tpu.memory_space<vmem>>, vector<4x8x1xf32>,
    %c0_i32_33 = arith.constant 0 : i32
    %34 = arith.cmpi eq, %arg2, %c0_i32_33 : i32
    %35 = arith.extui %34 : i1 to i32
    %c0_i32_34 = arith.constant 0 : i32
    %36 = arith.cmpi ne, %35, %c0_i32_34 : i32
    scf.if %36 {
      %c0_35 = arith.constant 0 : index
      %c0_36 = arith.constant 0 : index
      %c0_37 = arith.constant 0 : index
      %37 = vector.load %arg11[%c0_35, %c0_36, %c0_37] : memref<4x8x1xf32, #tpu.memory_space<vmem>>, vector<4x8x1xf32>
      %38 = tpu.reciprocal %37 {approx = true} : vector<4x8x1xf32> -> vector<4x8x1xf32>
      %c0_38 = arith.constant 0 : index
      %c0_39 = arith.constant 0 : index
      %c0_40 = arith.constant 0 : index
      %39 = vector.load %arg9[%c0_38, %c0_39, %c0_40] : memref<4x8x8xf32, #tpu.memory_space<vmem>>, vector<4x8x8xf32>
      %40 = vector.broadcast %38 : vector<4x8x1xf32> to vector<4x8x8xf32>
      %41 = arith.mulf %39, %40 : vector<4x8x8xf32>
      %42 = arith.truncf %41 : vector<4x8x8xf32> to vector<4x8x8xbf16>
      %cst_41 = arith.constant 0.000000e+00 : f32
      %43 = vector.broadcast %cst_41 : f32 to vector<8x32xf32>
      %44 = vector.extract_strided_slice %42 {offsets = [0, 0, 0], sizes = [1, 8, 8], strides = [1, 1, 1]} : vector<4x8x8xbf16> to vector<1x8x8xbf16>
      %45 = vector.shape_cast %44 : vector<1x8x8xbf16> to vector<8x8xbf16>
      %c0_42 = arith.constant 0 : index
      %c0_43 = arith.constant 0 : index
      %c0_44 = arith.constant 0 : index
      %46 = vector.load %arg6[%c0_42, %c0_43, %c0_44] : memref<4x8x32xbf16, #tpu.memory_space<vmem>>, vector<1x8x32xbf16>
      %47 = vector.shape_cast %46 : vector<1x8x32xbf16> to vector<8x32xbf16>
      %cst_45 = arith.constant dense<0.000000e+00> : vector<8x32xf32>
      %48 = tpu.matmul %45, %47, %cst_45 {dimension_numbers = #tpu.dot_dimension_numbers<[1], [0], [0], [1], [0, 0, 1, 1], [], []>} : vector<8x8xbf16>, vector<8x32xbf16>, vector<8x32xf32> -> vector<8x32xf32>
      %49 = arith.addf %43, %48 : vector<8x32xf32>
      %50 = vector.extract_strided_slice %42 {offsets = [1, 0, 0], sizes = [1, 8, 8], strides = [1, 1, 1]} : vector<4x8x8xbf16> to vector<1x8x8xbf16>
      %51 = vector.shape_cast %50 : vector<1x8x8xbf16> to vector<8x8xbf16>
      %c1 = arith.constant 1 : index
      %c0_46 = arith.constant 0 : index
      %c0_47 = arith.constant 0 : index
      %52 = vector.load %arg6[%c1, %c0_46, %c0_47] : memref<4x8x32xbf16, #tpu.memory_space<vmem>>, vector<1x8x32xbf16>
      %53 = vector.shape_cast %52 : vector<1x8x32xbf16> to vector<8x32xbf16>
      %cst_48 = arith.constant dense<0.000000e+00> : vector<8x32xf32>
      %54 = tpu.matmul %51, %53, %cst_48 {dimension_numbers = #tpu.dot_dimension_numbers<[1], [0], [0], [1], [0, 0, 1, 1], [], []>} : vector<8x8xbf16>, vector<8x32xbf16>, vector<8x32xf32> -> vector<8x32xf32>
      %55 = arith.addf %49, %54 : vector<8x32xf32>
      %56 = vector.extract_strided_slice %42 {offsets = [2, 0, 0], sizes = [1, 8, 8], strides = [1, 1, 1]} : vector<4x8x8xbf16> to vector<1x8x8xbf16>
      %57 = vector.shape_cast %56 : vector<1x8x8xbf16> to vector<8x8xbf16>
      %c2 = arith.constant 2 : index
      %c0_49 = arith.constant 0 : index
      %c0_50 = arith.constant 0 : index
      %58 = vector.load %arg6[%c2, %c0_49, %c0_50] : memref<4x8x32xbf16, #tpu.memory_space<vmem>>, vector<1x8x32xbf16>
      %59 = vector.shape_cast %58 : vector<1x8x32xbf16> to vector<8x32xbf16>
      %cst_51 = arith.constant dense<0.000000e+00> : vector<8x32xf32>
      %60 = tpu.matmul %57, %59, %cst_51 {dimension_numbers = #tpu.dot_dimension_numbers<[1], [0], [0], [1], [0, 0, 1, 1], [], []>} : vector<8x8xbf16>, vector<8x32xbf16>, vector<8x32xf32> -> vector<8x32xf32>
      %61 = arith.addf %55, %60 : vector<8x32xf32>
      %62 = vector.extract_strided_slice %42 {offsets = [3, 0, 0], sizes = [1, 8, 8], strides = [1, 1, 1]} : vector<4x8x8xbf16> to vector<1x8x8xbf16>
      %63 = vector.shape_cast %62 : vector<1x8x8xbf16> to vector<8x8xbf16>
      %c3 = arith.constant 3 : index
      %c0_52 = arith.constant 0 : index
      %c0_53 = arith.constant 0 : index
      %64 = vector.load %arg6[%c3, %c0_52, %c0_53] : memref<4x8x32xbf16, #tpu.memory_space<vmem>>, vector<1x8x32xbf16>
      %65 = vector.shape_cast %64 : vector<1x8x32xbf16> to vector<8x32xbf16>
      %cst_54 = arith.constant dense<0.000000e+00> : vector<8x32xf32>
      %66 = tpu.matmul %63, %65, %cst_54 {dimension_numbers = #tpu.dot_dimension_numbers<[1], [0], [0], [1], [0, 0, 1, 1], [], []>} : vector<8x8xbf16>, vector<8x32xbf16>, vector<8x32xf32> -> vector<8x32xf32>
      %67 = arith.addf %61, %66 : vector<8x32xf32>
      %c0_55 = arith.constant 0 : index
      %c0_56 = arith.constant 0 : index
      %68 = vector.load %arg7[%c0_55, %c0_56] : memref<1x32xf32, #tpu.memory_space<vmem>>, vector<1x32xf32>
      %69 = vector.broadcast %68 : vector<1x32xf32> to vector<8x32xf32>
      %70 = arith.addf %67, %69 : vector<8x32xf32>
      %c0_57 = arith.constant 0 : index
      %c0_58 = arith.constant 0 : index
      %c0_59 = arith.constant 0 : index
      %71 = vector.load %arg8[%c0_57, %c0_58, %c0_59] : memref<1x8x32xf32, #tpu.memory_space<vmem>>, vector<1x8x32xf32>
      %72 = vector.shape_cast %71 : vector<1x8x32xf32> to vector<8x32xf32>
      %73 = vector.shape_cast %70 : vector<8x32xf32> to vector<1x8x32xf32>
      tpu.vector_store %arg8[%c0_57, %c0_58, %c0_59], %73 {strides = array<i32>} : memref<1x8x32xf32, #tpu.memory_space<vmem>>, vector<1x8x32xf32>,
    } else {
    }
    return
  }
  func.func @transform_0(%arg0: i32, %arg1: i32, %arg2: i32) -> (i32, i32, i32, i32) {
    %c0_i32 = arith.constant 0 : i32
    %c0_i32_0 = arith.constant 0 : i32
    %c0_i32_1 = arith.constant 0 : i32
    return %arg0, %c0_i32, %arg1, %c0_i32_0 : i32, i32, i32, i32
  }
  func.func @transform_1(%arg0: i32, %arg1: i32, %arg2: i32) -> (i32, i32, i32, i32) {
    %c0_i32 = arith.constant 0 : i32
    %c0_i32_0 = arith.constant 0 : i32
    %c0_i32_1 = arith.constant 0 : i32
    return %arg0, %c0_i32, %arg2, %c0_i32_0 : i32, i32, i32, i32
  }
  func.func @transform_2(%arg0: i32, %arg1: i32, %arg2: i32) -> (i32, i32, i32, i32) {
    %c0_i32 = arith.constant 0 : i32
    %c0_i32_0 = arith.constant 0 : i32
    %c0_i32_1 = arith.constant 0 : i32
    return %arg0, %c0_i32, %arg2, %c0_i32_0 : i32, i32, i32, i32
  }
  func.func @transform_3(%arg0: i32, %arg1: i32, %arg2: i32) -> (i32, i32, i32) {
    %c0_i32 = arith.constant 0 : i32
    %c0_i32_0 = arith.constant 0 : i32
    %c0_i32_1 = arith.constant 0 : i32
    %c0_i32_2 = arith.constant 0 : i32
    return %c0_i32, %c0_i32_0, %c0_i32_1 : i32, i32, i32
  }
  func.func @transform_4(%arg0: i32, %arg1: i32, %arg2: i32) -> (i32, i32) {
    %c0_i32 = arith.constant 0 : i32
    %c0_i32_0 = arith.constant 0 : i32
    %c0_i32_1 = arith.constant 0 : i32
    return %c0_i32, %c0_i32_0 : i32, i32
  }
  func.func @transform_5(%arg0: i32, %arg1: i32, %arg2: i32) -> (i32, i32, i32) {
    %c0_i32 = arith.constant 0 : i32
    %c0_i32_0 = arith.constant 0 : i32
    return %arg0, %arg1, %c0_i32 : i32, i32, i32
  }
}

</mosaic_0001>

<bundles_post_ra>
// kernel: tpu_custom_call.1
= control target key start
LH: loop header
LB: loop body
LE: loop exit
PB: predicated region body
PF: predicated region fallthrough
CT: control target
= control target key end

     0   :  { %s1716_s0 = inlined_call_operand.hbm [shape: bf16[2,4,8,8], index: 0, kind: input, shape index: {}]   ;;  %s1717_s1 = inlined_call_operand.hbm [shape: bf16[2,4,8,8], index: 1, kind: input, shape index: {}]   ;;  %s1718_s2 = inlined_call_operand.hbm [shape: bf16[2,4,8,8], index: 2, kind: input, shape index: {}]   ;;  %s1719_s3 = inlined_call_operand.hbm [shape: bf16[4,8,32], index: 3, kind: input, shape index: {}]   ;;  %s1720_s4 = inlined_call_operand.vmem [shape: f32[1,32], index: 4, kind: input, shape index: {}]   ;;  %s1721_s5 = inlined_call_operand.hbm [shape: f32[2,8,32], index: 5, kind: output, shape index: {}]  }
   0x1   :  { %1729 = sst [smem:[#allocation21_spill]] %s1716_s0 }
   0x2   :  { %1730 = sst [smem:[#allocation22_spill]] %s1717_s1 }
   0x3   :  { %1731 = sst [smem:[#allocation23_spill]] %s1719_s3 }
   0x4   :  { %10 = vsyncpa [#allocation6], 0 }
   0x5   :  { %12 = vsyncpa [#allocation6 + $0x1], 0 }
   0x6   :  { %13 = vsyncpa [#allocation9], 0 }
   0x7   :  { %15 = vsyncpa [#allocation9 + $0x1], 0 }
   0x8   :  { %16 = vsyncpa [#allocation12], 0 }
   0x9   :  { %17 = vsyncpa [#allocation7], 0 }
   0xa   :  { %19 = vsyncpa [#allocation7 + $0x1], 0  ;;  %s1403_s18 = smov 0   ;;  %s1405_s19 = smov 0  }
   0xb   :  { %s1407_s20 = smov 0   ;;  %s1409_s21 = smov 0  }
   0xc   :  { %s1411_s22 = smov 0   ;;  %s1413_s23 = smov 0  }
   0xd LB: > { %1732 = sst [smem:[#allocation18_spill]] %s1361_s22  ;;  %s44_s24 = sadd.s32 1, %s1361_s22  ;;  %s1365_s23 = sphi %s1413_s23, %s25_s23   ;;  %s1361_s22 = sphi %s1411_s22, %s1748_s22   ;;  %s1357_s21 = sphi %s1409_s21, %s1747_s21   ;;  %s1353_s20 = sphi %s1407_s20, %s1751_s20   ;;  %s1349_s19 = sphi %s1405_s19, %s1750_s19   ;;  %s1345_s18 = sphi %s1403_s18, %s1749_s18  }
   0xe   : > { %s53_s25 = sadd.s32 1, %s1353_s20  ;;  %p46_p0 = scmp.ge.s32.totalorder %s44_s24, 2 }
   0xf   : > { %p60_p1 = scmp.ne.s32.totalorder %s1353_s20, %s1349_s19  ;;  %p61_p2 = scmp.eq.s32.totalorder %s1365_s23, 0 }
  0x10   : > { %s1753_s24 = smov (%p46_p0, %s44_s24), 0  ;;  %p1004_p4 = scmp.ge.s32.totalorder %s1365_s23, 2 }
  0x11   : > { %1733 = sst [smem:[#allocation19_spill]] %s1753_s24  ;;  %p62_p3 = por %p61_p2, %p60_p1 }
  0x12   : > { %s48_s26 = ssub.s32 %s1361_s22, %s1753_s24  ;;  %p1070_p6 = scmp.lt.s32.totalorder %s1365_s23, 2 }
  0x13   : > { %p51_p5 = scmp.eq.s32.totalorder %s48_s26, 0  ;;  %s1722_s27 = sand.u32 1, %s1353_s20  }
  0x14   : > { %s1449_s28 = sshll.u32 %s1361_s22, 4  ;;  %s1456_s30 = sshll.u32 %s1722_s27, 4 }
  0x15   : > { %s1452_s29 = scalar_select %p51_p5, %s1353_s20, %s53_s25  }
  0x16   : > { %p1458_p7 = pnand %p1070_p6, %p62_p3  ;;  %s256_s7 = sand.u32 1, %s1365_s23  }
  0x17   : > { %1734 = sst [smem:[#allocation20_spill]] %s1452_s29  ;;  %s260_s11 = scalar_lea.vmem [#allocation8], %s1456_s30 }
  0x18   : > { %s1736_s1 = sld [smem:[#allocation22_spill]]  ;;  %s269_s12 = sshll.u32 %s260_s11, 4  ;;  %s270_s12 = int_to_ptr.vmem [resolvable:$true] %s269_s12 }
  0x19   : > { %s1468_s14 = scalar_lea.sflag [#allocation9], %s256_s7  ;;  %s1723_s15 = smov 64  }
  0x1a   : > { %s1725_s16 = smov 4   ;;  %s1477_s17 = sadd.s32 4294967295, %s1365_s23  }
  0x1b   : > { %s1001_s25 = sadd.s32 4294967294, %s1365_s23   ;;  %p66_p8 = scmp.ne.s32.totalorder %s1349_s19, %s1345_s18 }
  0x1c   : > { %p67_p9 = scmp.eq.s32.totalorder %s1477_s17, 0  ;;  %p190_p10 = scmp.eq.s32.totalorder %s1477_s17, 1 }
  0x1d   : > { %p196_p11 = scmp.eq.s32.totalorder %s1001_s25, 1  ;;  %p1002_p12 = scmp.ge.s32.totalorder %s1365_s23, 1 }
  0x1e   : > { %s266_s10 = scalar_lea.hbm %s1736_s1, %s1449_s28  ;;  %p1487_p13 = por %p67_p9, %p66_p8 }
  0x1f   : > { %s267_s13 = sshll.u32 %s266_s10, 4  ;;  %p1494_p0 = por %p190_p10, %p60_p1  ;;  %s268_s13 = int_to_ptr.hbm [resolvable:$true] %s267_s13 }
  0x20   : > { %1061 = dma.hbm_to_vmem [thread:$0]  (!%p1458_p7), %s268_s13, 256, %s270_s12, %s1468_s14, %s1723_s15, %s1723_s15, %s1725_s16  }
  0x21   : > { %p1498_p2 = por %p196_p11, %p66_p8  ;;  %p203_p3 = scmp.lt.s32.totalorder %s1365_s23, 3 }
  0x22   : > { %s1740_s3 = sld [smem:[#allocation23_spill]]  ;;  %s1369_s13 = smov [#allocation11]  }
  0x23   : > { %p1506_p5 = pnand %p1002_p12, %p203_p3  ;;  %s216_s25 = sshll.u32 %s1369_s13, 4  ;;  %s217_s25 = int_to_ptr.vmem [resolvable:$true] %s216_s25 }
  0x24   : > { %s1742_s0 = sld [smem:[#allocation21_spill]]  ;;  %s237_s16 = scalar_lea.vmem [#allocation5], %s1456_s30 }
  0x25   : > { %p1051_p1 = pneg %p1506_p5  ;;  %s246_s1 = sshll.u32 %s237_s16, 4  ;;  %s247_s1 = int_to_ptr.vmem [resolvable:$true] %s246_s1 }
  0x26   : > { %s1744_s24 = smov 64   ;;  %s1745_s22 = sand.u32 1, %s1353_s20  }
  0x27   : > { %p1052_p6 = pnand %p1051_p1, %p67_p9  ;;  %s234_s13 = scalar_lea.sflag [#allocation6], %s1745_s22 }
  0x28   : > { %s214_s11 = sshll.u32 %s1740_s3, 4  ;;  %s1743_s3 = smov 4   ;;  %s215_s11 = int_to_ptr.hbm [resolvable:$true] %s214_s11 }
  0x29   : > { %1054 = dma.hbm_to_vmem [thread:$0]  (!%p1052_p6), %s215_s11, 256, %s217_s25, [#allocation12], %s1744_s24, %s1744_s24, %s1743_s3  }
  0x2a   : > { %s243_s10 = scalar_lea.hbm %s1742_s0, %s1449_s28  ;;  %s289_s0 = scalar_lea.hbm %s1718_s2, %s1449_s28 }
  0x2b   : > { %s244_s15 = sshll.u32 %s243_s10, 4  ;;  %s283_s10 = scalar_lea.vmem [#allocation10], %s1456_s30  ;;  %s245_s15 = int_to_ptr.hbm [resolvable:$true] %s244_s15 }
  0x2c   : > { %1058 = dma.hbm_to_vmem [thread:$0]  (!%p1458_p7), %s245_s15, 256, %s247_s1, %s234_s13, %s1744_s24, %s1744_s24, %s1743_s3  }
  0x2d   : > { %s292_s29 = sshll.u32 %s283_s10, 4  ;;  %s290_s16 = sshll.u32 %s289_s0, 4  ;;  %s293_s29 = int_to_ptr.vmem [resolvable:$true] %s292_s29  ;;  %s291_s16 = int_to_ptr.hbm [resolvable:$true] %s290_s16 }
  0x2e   : > { %1064 = dma.hbm_to_vmem [thread:$0]  (!%p1458_p7), %s291_s16, 256, %s293_s29, %s1468_s14, %s1744_s24, %s1744_s24, %s1743_s3  }
  0x2f   : > { %304 = sbr.rel (%p1506_p5) target bundleno = 836 (0x344), region = 40  ;;  %s1543_s1 = sand.u32 (!%p1506_p5), 1, %s1349_s19  }
  0x30   : > { %s1015_s22 = sshll.u32 (!%p1506_p5), %s1543_s1, 4  ;;  %s307_s28 = scalar_lea.sflag (!%p1506_p5), [#allocation6], %s1543_s1 }
  0x31   : > { %s310_s30 = scalar_lea.vmem (!%p1506_p5), [#allocation5], %s1015_s22 }
  0x34   : > { %1328 = dma.done.wait (%p1487_p13), %s307_s28, 256  }
  0x35   : > { %1330 = vsyncadd (%p1487_p13), %s307_s28, 4294967040  ;;  %s316_s0 = sand.u32 1, %s1477_s17   ;;  %s320_s24 = scalar_lea.vmem [#allocation8], %s1015_s22 }
  0x36   : > { %s317_s3 = scalar_lea.sflag [#allocation9], %s316_s0 }
  0x37   : > { %1332 = dma.done.wait (%p1487_p13), %s317_s3, 512  }
  0x38   : > { %1334 = vsyncadd (%p1487_p13), %s317_s3, 4294966784  ;;  %s1556_s29 = scalar_lea.vmem [#allocation10], %s1015_s22 }
  0x39   : > { %1336 = dma.done.wait (%p67_p9), [#allocation12], 256  }
  0x3a   : > { %1338 = vsyncadd (%p67_p9), [#allocation12], 4294967040  ;;  %vm387_vm0 = vcmask 64512   ;;  %v396_v0 = vld [vmem:[%s320_s24] sm:$0xf]  ;;  %vm378_vm1 = vcmask 7168  }
  0x3b   : > { %v398_v1 = vld [vmem:[%s320_s24 + $0x8] sm:$0xf]  ;;  %v409_v2 = vsel %vm387_vm0, %v396_v0, 0  ;;  %v397_v4 = vld [vmem:[%s320_s24 + $0x4] sm:$0xf]  ;;  %v1370_v12 = vmov -inf  }
  0x3c   : > { %v447_v3 = vsel %vm387_vm0, %v398_v1, 0  ;;  %418 = vmatpush.bf16.xpose.msra.mxu0 %v409_v2  ;;  %v428_v5 = vsel %vm387_vm0, %v397_v4, 0  ;;  %v399_v6 = vld [vmem:[%s320_s24 + $0xc] sm:$0xf]  ;;  %v392_v8 = vld [vmem:[%s310_s30] sm:$0xf] }
  0x3d   : > { %456 = vmatpush.bf16.xpose.msra.mxu2 %v447_v3  ;;  %437 = vmatpush.bf16.xpose.msra.mxu1 %v428_v5  ;;  %v466_v7 = vsel %vm387_vm0, %v399_v6, 0  ;;  %v394_v9 = vld [vmem:[%s310_s30 + $0x8] sm:$0xf]  ;;  %v393_v10 = vld [vmem:[%s310_s30 + $0x4] sm:$0xf]  ;;  %379 = vst.msk [vmem:[#allocation3] sm:$0xff] %vm378_vm1, %v1370_v12 }
  0x3e   : > { %475 = vmatpush.bf16.xpose.msra.mxu3 %v466_v7  ;;  %v395_v11 = vld [vmem:[%s310_s30 + $0xc] sm:$0xf]  ;;  %380 = vst.msk [vmem:[#allocation3 + $0x8] sm:$0xff] %vm378_vm1, %v1370_v12  ;;  %v1371_v25 = vmov 0   ;;  %v1372_v26 = vmov 0.0   ;;  %vm621_vm2 = vcmask 1043456  }
  0x3f   : > { %381 = vst.msk [vmem:[#allocation3 + $0x10] sm:$0xff] %vm378_vm1, %v1370_v12  ;;  %1128 = vset.pattern.permute.xlu0 %v1371_v25  ;;  %1127 = vset.pattern.permute.xlu2 %v1371_v25  ;;  %v402_v43 = vld [vmem:[%s1556_s29 + $0x8] sm:$0xf]  ;;  %v403_v45 = vld [vmem:[%s1556_s29 + $0xc] sm:$0xf]  ;;  %s1019_s6 = sshll.u32 %s1543_s1, 3 }
  0x40   : > { %382 = vst.msk [vmem:[#allocation3 + $0x18] sm:$0xff] %vm378_vm1, %v1370_v12  ;;  %1129 = vset.pattern.permute.xlu1 %v1371_v25  ;;  %v661_v44 = vsel %vm621_vm2, %v402_v43, 0  ;;  %v680_v46 = vsel %vm621_vm2, %v403_v45, 0  ;;  %v400_v47 = vld [vmem:[%s1556_s29] sm:$0xf]  ;;  %s1033_s14 = sshll.u32 %s1357_s21, 3 }
  0x41   : > { %385 = vst.msk [vmem:[#allocation4 + $0x10] sm:$0xff] %vm378_vm1, %v1372_v26  ;;  %v623_v49 = vsel %vm621_vm2, %v400_v47, 0  ;;  %v401_v54 = vld [vmem:[%s1556_s29 + $0x4] sm:$0xf]  ;;  %s854_s26 = scalar_lea.hbm %s1721_s5, %s1033_s14  ;;  %s372_s25 = scalar_lea.vmem [#allocation13], %s1019_s6  ;;  %vm840_vm3 = vcmask 261120  }
  0x42   : > { %383 = vst.msk [vmem:[#allocation4] sm:$0xff] %vm378_vm1, %v1372_v26  ;;  %v642_v56 = vsel %vm621_vm2, %v401_v54, 0  ;;  %s856_s13 = sshll.u32 %s372_s25, 4  ;;  %s858_s27 = sshll.u32 %s854_s26, 4  ;;  %s857_s13 = int_to_ptr.vmem [resolvable:$true] %s856_s13  ;;  %s859_s27 = int_to_ptr.hbm [resolvable:$true] %s858_s27 }
  0x43   : > { %1020 = vmatmul.msk.bf16.vlgmr.msra.gmra.mxu0 %vm387_vm0, %v392_v8  ;;  %384 = vst.msk [vmem:[#allocation4 + $0x8] sm:$0xff] %vm378_vm1, %v1372_v26  ;;  %s843_s21 = scalar_lea.sflag [#allocation7], %s1543_s1  ;;  %s1289_s9 = sshra.s32 %s859_s27, 4  ;;  %s1290_s9 = int_to_ptr.hbm [resolvable:$true] %s1289_s9 }
  0x44   : > { %1022 = vmatmul.msk.bf16.vlgmr.msra.gmra.mxu2 %vm387_vm0, %v394_v9  ;;  %1021 = vmatmul.msk.bf16.vlgmr.msra.gmra.mxu1 %vm387_vm0, %v393_v10  ;;  %386 = vst.msk [vmem:[#allocation4 + $0x18] sm:$0xff] %vm378_vm1, %v1372_v26  ;;  %v1595_v27 = vld [vmem:[#allocation3] sm:$0xff]  ;;  %s1291_s10 = scalar_lea.hbm %s1290_s9, 8  ;;  %s1295_s28 = scalar_lea.hbm %s1721_s5, 16 }
  0x45   : > { %1023 = vmatmul.msk.bf16.vlgmr.msra.gmra.mxu3 %vm387_vm0, %v395_v11  ;;  %388 = vst.msk [vmem:[#allocation2] sm:$0xff] %vm387_vm0, %v1372_v26  ;;  %v1607_v33 = vld [vmem:[#allocation3 + $0x8] sm:$0xff]  ;;  %670 = vmatpush.bf16.msrb.mxu2 %v661_v44  ;;  %p1292_p7 = scmp.ne.s32.totalorder %s1290_s9, %s1291_s10  ;;  %p1296_p10 = scmp.lt.s32.totalorder %s1290_s9, %s1721_s5 }
  0x46   : > { %389 = vst.msk [vmem:[#allocation2 + $0x8] sm:$0xff] %vm387_vm0, %v1372_v26  ;;  %v1605_v31 = vld [vmem:[#allocation3 + $0x10] sm:$0xff]  ;;  %689 = vmatpush.bf16.msrb.mxu3 %v680_v46  ;;  %632 = vmatpush.bf16.msrb.mxu0 %v623_v49  ;;  %p1297_p11 = scmp.lt.s32.totalorder %s1295_s28, %s1291_s10 }
  0x47   : > { %390 = vst.msk [vmem:[#allocation2 + $0x10] sm:$0xff] %vm387_vm0, %v1372_v26  ;;  %v1625_v39 = vld [vmem:[#allocation3 + $0x18] sm:$0xff]  ;;  %651 = vmatpush.bf16.msrb.mxu1 %v642_v56  ;;  %p1293_p8 = pnand %p1292_p7, %p1494_p0 }
  0x48   : > { %391 = vst.msk [vmem:[#allocation2 + $0x18] sm:$0xff] %vm387_vm0, %v1372_v26  ;;  %p1298_p12 = por %p1297_p11, %p1296_p10 }
  0x49   : > { %p1294_p9 = pneg %p1293_p8 }
  0x4a   : > { %v558_v49 = vld [vmem:[#allocation4 + $0x8] sm:$0xff] }
  0x4b   : > { %p1299_p13 = pnand %p1298_p12, %p1294_p9 }
  0xc0   : > { %v1574_v13 = vpop.f32.mrf.mxu0 }
  0xc1   : > { %v485_v14 = vsel %vm387_vm0, %v1574_v13, -inf  ;;  %v1578_v15 = vpop.f32.mrf.mxu1 }
  0xc2   : > { %486 = vmax.xlane.f32.xlu1 %v485_v14  ;;  %v488_v18 = vsel %vm387_vm0, %v1578_v15, -inf }
  0xc7   : > { %v458_v16 = vpop.f32.mrf.mxu2 }
  0xc8   : > { %v491_v17 = vsel %vm387_vm0, %v458_v16, -inf  ;;  %v422_v19 = vpop.f32.mrf.mxu0  ;;  %v1583_v20 = vpop.f32.mrf.mxu3 }
  0xc9   : > { %492 = vmax.xlane.f32.xlu0 %v491_v17  ;;  %v441_v21 = vpop.f32.mrf.mxu1  ;;  %v494_v22 = vsel %vm387_vm0, %v1583_v20, -inf }
  0xca   : > { %489 = vmax.xlane.f32.xlu1 %v488_v18 }
  0xcf   : > { %v460_v23 = vpop.f32.mrf.mxu2 }
  0xd0   : > { %v479_v24 = vpop.f32.mrf.mxu3 }
  0xd1   : > { %495 = vmax.xlane.f32.xlu0 %v494_v22 }
 0x135   : > { %v487_v28 = vpop.xlane.xlu1 %486 }
 0x136   : > { %v1598_v29 = vmax.f32 %v1595_v27, %v487_v28 }
 0x138   : > { %v501_v30 = vsub.f32 %v1595_v27, %v1598_v29  ;;  %703 = vst.msk [vmem:[#allocation3] sm:$0xff] %vm378_vm1, %v1598_v29  ;;  %515 = vperm.xlu0 %1128, %v1598_v29   ;;  %v560_v27 = vld [vmem:[#allocation4 + $0x18] sm:$0xff] }
 0x13a   : > { %v505_v26 = vmul.f32 1.442695, %v501_v30 }
 0x13c   : > { %v493_v32 = vpop.xlane.xlu0 %492 }
 0x13d   : > { %v1610_v34 = vmax.f32 %v1605_v31, %v493_v32  ;;  %v490_v35 = vpop.xlane.xlu1 %489 }
 0x13e   : > { %v1617_v37 = vmax.f32 %v1607_v33, %v490_v35 }
 0x13f   : > { %v503_v36 = vsub.f32 %v1605_v31, %v1610_v34  ;;  %705 = vst.msk [vmem:[#allocation3 + $0x10] sm:$0xff] %vm378_vm1, %v1610_v34  ;;  %525 = vperm.xlu2 %1127, %v1610_v34  }
 0x140   : > { %v502_v38 = vsub.f32 %v1607_v33, %v1617_v37  ;;  %704 = vst.msk [vmem:[#allocation3 + $0x8] sm:$0xff] %vm378_vm1, %v1617_v37  ;;  %520 = vperm.xlu1 %1129, %v1617_v37   ;;  %v557_v37 = vld [vmem:[#allocation4] sm:$0xff] }
 0x141   : > { %v509_v25 = vmul.f32 1.442695, %v503_v36 }
 0x142   : > { %v507_v32 = vmul.f32 1.442695, %v502_v38 }
 0x144   : > { %v496_v40 = vpop.xlane.xlu0 %495 }
 0x145   : > { %v500_v41 = vmax.f32 %v1625_v39, %v496_v40  ;;  %v559_v40 = vld [vmem:[#allocation4 + $0x10] sm:$0xff] }
 0x147   : > { %v504_v42 = vsub.f32 %v1625_v39, %v500_v41  ;;  %706 = vst.msk [vmem:[#allocation3 + $0x18] sm:$0xff] %vm378_vm1, %v500_v41  ;;  %530 = vperm.xlu2 %1127, %v500_v41  }
 0x149   : > { %v511_v22 = vmul.f32 1.442695, %v504_v42 }
 0x199   : > { %v526_v48 = vpop.permute.xlu2 %525 }
 0x19a   : > { %v535_v50 = vsub.f32 %v458_v16, %v526_v48 }
 0x19c   : > { %v539_v51 = vpack.c.bf16 %v535_v50, %v535_v50 }
 0x19e   : > { %v543_v52 = vunpack.c.l.bf16 %v539_v51 }
 0x1a0   : > { %v549_v53 = vmul.f32 1.442695, %v543_v52 }
 0x1a1   : > { %v531_v55 = vpop.permute.xlu2 %530 }
 0x1a2   : > { %1131 = vpow2.f32 %v549_v53  ;;  %v536_v57 = vsub.f32 %v1583_v20, %v531_v55 }
 0x1a4   : > { %v540_v58 = vpack.c.bf16 %v536_v57, %v536_v57  ;;  %v593_v57 = vld [vmem:[#allocation2 + $0x18] sm:$0xff] }
 0x1a6   : > { %v544_v59 = vunpack.c.l.bf16 %v540_v58 }
 0x1a8   : > { %v1132_v60 = vpop.eup %1131  ;;  %v551_v61 = vmul.f32 1.442695, %v544_v59  ;;  %v592_v59 = vld [vmem:[#allocation2 + $0x10] sm:$0xff] }
 0x1a9   : > { %v555_v62 = vpack.c.bf16 %v1132_v60, %v1132_v60 }
 0x1aa   : > { %1133 = vpow2.f32 %v551_v61  ;;  %v516_v63 = vpop.permute.xlu0 %515 }
 0x1ab   : > { %1026 = vmatmul.msk.bf16.vlgmr.msrb.gmra.mxu2 %vm387_vm0, %v555_v62  ;;  %v567_v0 = vunpack.c.l.bf16 %v555_v62  ;;  %v533_v1 = vsub.f32 %v1574_v13, %v516_v63 }
 0x1ad   : > { %v575_v2 = vsel %vm387_vm0, %v567_v0, 0.0  ;;  %v537_v3 = vpack.c.bf16 %v533_v1, %v533_v1 }
 0x1ae   : > { %576 = vadd.xlane.f32.xlu2 %v575_v2 }
 0x1af   : > { %v541_v5 = vunpack.c.l.bf16 %v537_v3 }
 0x1b0   : > { %v1134_v4 = vpop.eup %1133 }
 0x1b1   : > { %v556_v6 = vpack.c.bf16 %v1134_v4, %v1134_v4  ;;  %v545_v7 = vmul.f32 1.442695, %v541_v5  ;;  %v590_v5 = vld [vmem:[#allocation2] sm:$0xff] }
 0x1b2   : > { %v521_v8 = vpop.permute.xlu1 %520 }
 0x1b3   : > { %1027 = vmatmul.msk.bf16.vlgmr.msrb.gmra.mxu3 %vm387_vm0, %v556_v6  ;;  %v568_v9 = vunpack.c.l.bf16 %v556_v6  ;;  %1135 = vpow2.f32 %v545_v7  ;;  %v534_v10 = vsub.f32 %v1578_v15, %v521_v8 }
 0x1b5   : > { %v578_v11 = vsel %vm387_vm0, %v568_v9, 0.0  ;;  %v538_v12 = vpack.c.bf16 %v534_v10, %v534_v10 }
 0x1b6   : > { %579 = vadd.xlane.f32.xlu1 %v578_v11  ;;  %v591_v11 = vld [vmem:[#allocation2 + $0x8] sm:$0xff] }
 0x1b7   : > { %v542_v13 = vunpack.c.l.bf16 %v538_v12 }
 0x1b9   : > { %v1136_v14 = vpop.eup %1135  ;;  %v547_v16 = vmul.f32 1.442695, %v542_v13 }
 0x1ba   : > { %v553_v17 = vpack.c.bf16 %v1136_v14, %v1136_v14 }
 0x1bb   : > { %1137 = vpow2.f32 %v547_v16  ;;  %v814_v16 = vld [vmem:[#allocation11 + $0xc] sm:$0xf] }
 0x1bc   : > { %1024 = vmatmul.msk.bf16.vlgmr.msrb.gmra.mxu0 %vm387_vm0, %v553_v17  ;;  %v565_v18 = vunpack.c.l.bf16 %v553_v17  ;;  %1139 = vpow2.f32 %v511_v22  ;;  %v819_v17 = vsel %vm621_vm2, %v814_v16, 0  ;;  %v750_v22 = vld [vmem:[#allocation11] sm:$0xf] }
 0x1bd   : > { %1141 = vpow2.f32 %v509_v25  ;;  %828 = vmatpush.bf16.msra.mxu3 %v819_v17 }
 0x1be   : > { %v569_v19 = vsel %vm387_vm0, %v565_v18, 0.0  ;;  %1143 = vpow2.f32 %v505_v26  ;;  %v792_v18 = vld [vmem:[#allocation11 + $0x8] sm:$0xf] }
 0x1bf   : > { %570 = vadd.xlane.f32.xlu0 %v569_v19  ;;  %1145 = vpow2.f32 %v507_v32  ;;  %v797_v19 = vsel %vm621_vm2, %v792_v18, 0 }
 0x1c0   : > { %806 = vmatpush.bf16.msra.mxu2 %v797_v19 }
 0x1c1   : > { %v1138_v20 = vpop.eup %1137 }
 0x1c2   : > { %v554_v21 = vpack.c.bf16 %v1138_v20, %v1138_v20  ;;  %v1140_v24 = vpop.eup %1139  ;;  %v752_v20 = vld [vmem:[#allocation11 + $0x4] sm:$0xf] }
 0x1c3   : > { %v1142_v28 = vpop.eup %1141  ;;  %v564_v29 = vmul.f32 %v1140_v24, %v560_v27 }
 0x1c4   : > { %1025 = vmatmul.msk.bf16.vlgmr.msrb.gmra.mxu1 %vm387_vm0, %v554_v21  ;;  %v566_v15 = vunpack.c.l.bf16 %v554_v21  ;;  %v1144_v35 = vpop.eup %1143  ;;  %v563_v31 = vmul.f32 %v1142_v28, %v559_v40  ;;  %v757_v21 = vsel %vm621_vm2, %v752_v20, 0 }
 0x1c5   : > { %v1146_v39 = vpop.eup %1145  ;;  %v561_v43 = vmul.f32 %v1144_v35, %v557_v37  ;;  %766 = vmatpush.bf16.msra.mxu0 %v757_v21 }
 0x1c6   : > { %v572_v23 = vsel %vm387_vm0, %v566_v15, 0.0  ;;  %v562_v52 = vmul.f32 %v1146_v39, %v558_v49  ;;  %v776_v15 = vsel %vm621_vm2, %v750_v22, 0 }
 0x1c7   : > { %573 = vadd.xlane.f32.xlu2 %v572_v23  ;;  %785 = vmatpush.bf16.msra.mxu1 %v776_v15 }
 0x1cf   : > { %611 = vperm.xlu1 %1129, %v1140_v24  }
 0x1df   : > { %606 = vperm.xlu2 %1127, %v1142_v28  }
 0x1e7   : > { %596 = vperm.xlu2 %1127, %v1144_v35  }
 0x1ef   : > { %601 = vperm.xlu2 %1127, %v1146_v39  }
 0x221   : > { %v577_v34 = vpop.xlane.xlu2 %576 }
 0x222   : > { %v583_v36 = vadd.f32 %v577_v34, %v563_v31 }
 0x224   : > { %588 = vst.msk [vmem:[#allocation4 + $0x10] sm:$0xff] %vm378_vm1, %v583_v36 }
 0x229   : > { %v580_v30 = vpop.xlane.xlu1 %579 }
 0x22a   : > { %v584_v41 = vadd.f32 %v580_v30, %v564_v29 }
 0x22b   : > { %v712_v42 = vld [vmem:[#allocation4 + $0x10] sm:$0xff] }
 0x22c   : > { %589 = vst.msk [vmem:[#allocation4 + $0x18] sm:$0xff] %vm378_vm1, %v584_v41  ;;  %1147 = vrcp.f32 %v712_v42 }
 0x22e   : > { %v672_v33 = vpop.f32.mrf.mxu2 }
 0x232   : > { %v1148_v38 = vpop.eup %1147  ;;  %v571_v44 = vpop.xlane.xlu0 %570 }
 0x233   : > { %734 = vperm.xlu0 %1128, %v1148_v38   ;;  %v713_v45 = vld [vmem:[#allocation4 + $0x18] sm:$0xff]  ;;  %v581_v46 = vadd.f32 %v571_v44, %v561_v43 }
 0x234   : > { %1149 = vrcp.f32 %v713_v45 }
 0x235   : > { %586 = vst.msk [vmem:[#allocation4] sm:$0xff] %vm378_vm1, %v581_v46 }
 0x236   : > { %v674_v47 = vpop.f32.mrf.mxu2  ;;  %v691_v48 = vpop.f32.mrf.mxu3 }
 0x239   : > { %v634_v51 = vpop.f32.mrf.mxu0 }
 0x23a   : > { %v1150_v50 = vpop.eup %1149  ;;  %v574_v53 = vpop.xlane.xlu2 %573 }
 0x23b   : > { %739 = vperm.xlu2 %1127, %v1150_v50   ;;  %v582_v54 = vadd.f32 %v574_v53, %v562_v52 }
 0x23c   : > { %v710_v55 = vld [vmem:[#allocation4] sm:$0xff] }
 0x23d   : > { %587 = vst.msk [vmem:[#allocation4 + $0x8] sm:$0xff] %vm378_vm1, %v582_v54  ;;  %1151 = vrcp.f32 %v710_v55 }
 0x23e   : > { %v693_v56 = vpop.f32.mrf.mxu3 }
 0x241   : > { %v612_v58 = vpop.permute.xlu1 %611  ;;  %v636_v61 = vpop.f32.mrf.mxu0 }
 0x242   : > { %v617_v60 = vmul.f32 %v612_v58, %v593_v57  ;;  %v653_v62 = vpop.f32.mrf.mxu1  ;;  %v607_v63 = vpop.permute.xlu2 %606 }
 0x243   : > { %v1152_v0 = vpop.eup %1151  ;;  %v616_v2 = vmul.f32 %v607_v63, %v592_v59 }
 0x244   : > { %v698_v1 = vadd.f32 %v691_v48, %v617_v60  ;;  %724 = vperm.xlu1 %1129, %v1152_v0   ;;  %v711_v3 = vld [vmem:[#allocation4 + $0x8] sm:$0xff]  ;;  %v1130_v48 = vld [vmem:[%s1720_s4] ss:$0 sm:$0xff] }
 0x245   : > { %v697_v4 = vadd.f32 %v672_v33, %v616_v2  ;;  %1153 = vrcp.f32 %v711_v3 }
 0x246   : > { %702 = vst.msk [vmem:[#allocation2 + $0x18] sm:$0xff] %vm387_vm0, %v698_v1 }
 0x247   : > { %701 = vst.msk [vmem:[#allocation2 + $0x10] sm:$0xff] %vm387_vm0, %v697_v4 }
 0x24a   : > { %v655_v6 = vpop.f32.mrf.mxu1  ;;  %v597_v7 = vpop.permute.xlu2 %596 }
 0x24b   : > { %v1154_v8 = vpop.eup %1153  ;;  %v614_v9 = vmul.f32 %v597_v7, %v590_v5 }
 0x24c   : > { %729 = vperm.xlu2 %1127, %v1154_v8  }
 0x24d   : > { %v695_v10 = vadd.f32 %v634_v51, %v614_v9  ;;  %v721_v23 = vld [vmem:[#allocation2 + $0x18] sm:$0xff] }
 0x24e   : > { %v720_v28 = vld [vmem:[#allocation2 + $0x10] sm:$0xff] }
 0x24f   : > { %699 = vst.msk [vmem:[#allocation2] sm:$0xff] %vm387_vm0, %v695_v10 }
 0x252   : > { %v602_v12 = vpop.permute.xlu2 %601 }
 0x253   : > { %v615_v13 = vmul.f32 %v602_v12, %v591_v11 }
 0x255   : > { %v696_v14 = vadd.f32 %v653_v62, %v615_v13 }
 0x256   : > { %v718_v27 = vld [vmem:[#allocation2] sm:$0xff] }
 0x257   : > { %700 = vst.msk [vmem:[#allocation2 + $0x8] sm:$0xff] %vm387_vm0, %v696_v14 }
 0x25e   : > { %v719_v39 = vld [vmem:[#allocation2 + $0x8] sm:$0xff] }
 0x295   : > { %v740_v24 = vpop.permute.xlu2 %739 }
 0x296   : > { %v745_v25 = vmul.f32 %v740_v24, %v721_v23 }
 0x298   : > { %v749_v26 = vpack.c.bf16 %v745_v25, %v745_v25 }
 0x29a   : > { %1031 = vmatmul.msk.bf16.vlgmr.msra.gmra.mxu3 %vm387_vm0, %v749_v26 }
 0x2a5   : > { %v735_v32 = vpop.permute.xlu0 %734 }
 0x2a6   : > { %v744_v35 = vmul.f32 %v735_v32, %v720_v28  ;;  %v730_v40 = vpop.permute.xlu2 %729 }
 0x2a7   : > { %v743_v34 = vmul.f32 %v730_v40, %v719_v39 }
 0x2a8   : > { %v748_v31 = vpack.c.bf16 %v744_v35, %v744_v35 }
 0x2a9   : > { %v747_v36 = vpack.c.bf16 %v743_v34, %v743_v34 }
 0x2aa   : > { %1030 = vmatmul.msk.bf16.vlgmr.msra.gmra.mxu2 %vm387_vm0, %v748_v31 }
 0x2ab   : > { %1028 = vmatmul.msk.bf16.vlgmr.msra.gmra.mxu0 %vm387_vm0, %v747_v36 }
 0x2b6   : > { %v725_v29 = vpop.permute.xlu1 %724 }
 0x2b7   : > { %v742_v30 = vmul.f32 %v725_v29, %v718_v27 }
 0x2b9   : > { %v746_v41 = vpack.c.bf16 %v742_v30, %v742_v30 }
 0x2bb   : > { %1029 = vmatmul.msk.bf16.vlgmr.msra.gmra.mxu1 %vm387_vm0, %v746_v41 }
 0x31d   : > { %v830_v42 = vpop.f32.mrf.mxu3 }
 0x325   : > { %v832_v33 = vpop.f32.mrf.mxu3 }
 0x328   : > { %v768_v37 = vpop.f32.mrf.mxu0 }
 0x32d   : > { %v808_v38 = vpop.f32.mrf.mxu2 }
 0x330   : > { %v770_v43 = vpop.f32.mrf.mxu0 }
 0x335   : > { %v810_v44 = vpop.f32.mrf.mxu2 }
 0x338   : > { %v787_v45 = vpop.f32.mrf.mxu1 }
 0x339   : > { %v788_v46 = vadd.f32 %v787_v45, %v768_v37 }
 0x33b   : > { %v812_v47 = vadd.f32 %v808_v38, %v788_v46 }
 0x33d   : > { %v834_v49 = vadd.f32 %v830_v42, %v812_v47 }
 0x33f   : > { %v839_v50 = vadd.f32 %v1130_v48, %v834_v49 }
 0x340   : > { %v789_v51 = vpop.f32.mrf.mxu1 }
 0x341   : > { %841 = vst.msk [vmem:[%s372_s25] sm:$0xff] %vm840_vm3, %v839_v50 }
 0x342   : > { %1302 = shalt.err (!%p1299_p13)
}
 0x343   : > { %1049 = dma.vmem_to_hbm [thread:$0]  (%p1494_p0), %s857_s13, 128, %s859_s27, %s843_s21  }
 0x344 PF: > { %s870_s1 = sand.u32 1, %s1345_s18   ;;  %p1066_p3 = pnand %p1004_p4, %p1498_p2 }
 0x345   : > { %s871_s3 = scalar_lea.sflag [#allocation7], %s870_s1 }
 0x346   : > { %p1067_p5 = pneg %p1066_p3 }
 0x348   : > { %1340 = dma.done.wait (%p1067_p5), %s871_s3, 128  }
 0x349   : > { %1342 = vsyncadd (%p1067_p5), %s871_s3, 4294967168  ;;  %s25_s23 = sadd.s32 1, %s1365_s23   ;;  %s1746_s24 = sld [smem:[#allocation20_spill]] }
 0x34a   : > { %p22_p1 = scmp.ge.s32.totalorder %s25_s23, 4   ;;  %s1747_s21 = sld [smem:[#allocation18_spill]] }
 0x34b   : > { %s1748_s22 = sld [smem:[#allocation19_spill]]  ;;  %s1749_s18 = smov %s1349_s19 }
 0x34c   : > { %s1750_s19 = smov %s1353_s20  ;;  %24 = sbr.rel (!%p22_p1) target bundleno = 13 (0xd), region = 124 }
 0x34f   : > { %s1751_s20 = smov %s1746_s24 }
 0x351   :  { %877 = vsyncpa [#allocation6], 1 }
 0x352   :  { %879 = vsyncpa [#allocation6 + $0x1], 1 }
 0x353   :  { %880 = vsyncpa [#allocation9], 1 }
 0x354   :  { %882 = vsyncpa [#allocation9 + $0x1], 1 }
 0x355   :  { %883 = vsyncpa [#allocation12], 1 }
 0x356   :  { %884 = vsyncpa [#allocation7], 1 }
 0x357   :  { %886 = vsyncpa [#allocation7 + $0x1], 1 }

</bundles_post_ra>
